<compile_context>
chip_gen: v7x
topology: tpu7x:2x2x1
jax: 0.10.0
libtpu: 0.0.40
codegen_flags: <defaults>
</compile_context>

<pallas_src>
import functools

import jax
import jax.numpy as jnp
from jax.experimental import pallas as pl
from jax.experimental.pallas import tpu as pltpu


# ----------------------------- Pallas kernel --------------------------------
def _sim_argmax_kernel(k_ref, q_ref, s_ref, arg_ref, m_sc, a_sc, *, hw_k, tk):
    ki = pl.program_id(2)
    eps2 = jnp.float32(1e-24)  # F.normalize(eps=1e-12) clamp, on the squared norm

    @pl.when(ki == 0)
    def _():
        m_sc[...] = jnp.full_like(m_sc, -jnp.inf)
        a_sc[...] = jnp.zeros_like(a_sc)

    k = k_ref[0]          # (F, tk) f32 -- one column per K patch
    q = q_ref[0]          # (F, tq) f32 -- one column per Q patch

    # L2-normalize K patches (columns): rsqrt (EUP) + multiply (VPU).
    k_sq = jnp.sum(k * k, axis=0, keepdims=True)                      # (1, tk)
    kn = (k * jax.lax.rsqrt(jnp.maximum(k_sq, eps2))).astype(jnp.bfloat16)
    qb = q.astype(jnp.bfloat16)   # Q normalization is folded into the final scale

    # (tk, tq) similarity tile on the MXU: bf16 inputs, f32 accumulation.
    s = jax.lax.dot_general(
        kn, qb,
        dimension_numbers=(((0,), (0,)), ((), ())),
        preferred_element_type=jnp.float32)

    # Global K indices for this tile; mask out zero-padded K positions.
    k_ids = ki * tk + jax.lax.broadcasted_iota(jnp.int32, s.shape, 0)
    s = jnp.where(k_ids < hw_k, s, -jnp.inf)

    # Per-tile max + first-occurrence argmax, then online accumulator update.
    tile_max = jnp.max(s, axis=0, keepdims=True)                      # (1, tq)
    tile_arg = jnp.min(
        jnp.where(s == tile_max, k_ids, jnp.int32(2 ** 30)),
        axis=0, keepdims=True)                                        # (1, tq)

    m_old = m_sc[...]
    better = tile_max > m_old        # strict '>' keeps earliest K tile on ties
    a_sc[...] = jnp.where(better, tile_arg, a_sc[...])
    m_sc[...] = jnp.where(better, tile_max, m_old)

    @pl.when(ki == pl.num_programs(2) - 1)
    def _():
        # Fold Q's L2 normalization into one per-column scale of the max.
        q_sq = jnp.sum(q * q, axis=0, keepdims=True)                  # (1, tq)
        s_ref[0] = m_sc[...] * jax.lax.rsqrt(jnp.maximum(q_sq, eps2))
        arg_ref[0] = a_sc[...]


def sim_argmax(k_unfold, q_unfold, *, tk_max=256, tq_max=256):
    """k_unfold: (B, F, HWk) f32, q_unfold: (B, F, HWq) f32
       -> (R_star (B, HWq) f32, R_arg (B, HWq) i32)."""
    B, F, HWk = k_unfold.shape
    HWq = q_unfold.shape[2]

    def _tile(n, t_max):
        if n <= t_max:
            return n, n                       # single full-extent block
        padded = ((n + t_max - 1) // t_max) * t_max
        return t_max, padded

    tk, HWk_p = _tile(HWk, tk_max)
    tq, HWq_p = _tile(HWq, tq_max)
    if HWk_p != HWk:
        k_unfold = jnp.pad(k_unfold, ((0, 0), (0, 0), (0, HWk_p - HWk)))
    if HWq_p != HWq:
        q_unfold = jnp.pad(q_unfold, ((0, 0), (0, 0), (0, HWq_p - HWq)))

    grid = (B, HWq_p // tq, HWk_p // tk)
    kernel = functools.partial(_sim_argmax_kernel, hw_k=HWk, tk=tk)

    out_shapes = (
        jax.ShapeDtypeStruct((B, 1, HWq_p), jnp.float32),
        jax.ShapeDtypeStruct((B, 1, HWq_p), jnp.int32),
    )
    s, arg = pl.pallas_call(
        kernel,
        out_shape=out_shapes,
        grid_spec=pltpu.PrefetchScalarGridSpec(
            num_scalar_prefetch=0,
            grid=grid,
            in_specs=[
                pl.BlockSpec((1, F, tk), lambda b, qi, ki: (b, 0, ki)),
                pl.BlockSpec((1, F, tq), lambda b, qi, ki: (b, 0, qi)),
            ],
            out_specs=[
                pl.BlockSpec((1, 1, tq), lambda b, qi, ki: (b, 0, qi)),
                pl.BlockSpec((1, 1, tq), lambda b, qi, ki: (b, 0, qi)),
            ],
            scratch_shapes=[
                pltpu.VMEM((1, tq), jnp.float32),   # running max
                pltpu.VMEM((1, tq), jnp.int32),     # running argmax
            ],
        ),
        compiler_params=pltpu.CompilerParams(
            dimension_semantics=("parallel", "parallel", "arbitrary"),
            vmem_limit_bytes=48 * 1024 * 1024,
        ),
    )(k_unfold, q_unfold)
    return s[:, 0, :HWq], arg[:, 0, :HWq]


# ------------------------------ JAX glue -------------------------------------
def unfold3x3(x):
    """F.unfold(x, kernel_size=3, padding=1) for NCHW x -> (B, C*9, H*W)."""
    B, C, H, W = x.shape
    xp = jnp.pad(x, ((0, 0), (0, 0), (1, 1), (1, 1)))
    patches = []
    for ki in range(3):
        for kj in range(3):
            patches.append(xp[:, :, ki:ki + H, kj:kj + W])     # (B, C, H, W)
    p = jnp.stack(patches, axis=2)                             # (B, C, 9, H, W)
    return p.reshape(B, C * 9, H * W)


def fold3x3(cols, H, W):
    """F.fold(cols, output_size=(H, W), kernel_size=3, padding=1)."""
    B, CF, _ = cols.shape
    C = CF // 9
    p = cols.reshape(B, C, 3, 3, H, W)
    out = jnp.zeros((B, C, H + 2, W + 2), dtype=cols.dtype)
    for ki in range(3):
        for kj in range(3):
            out = out.at[:, :, ki:ki + H, kj:kj + W].add(p[:, :, ki, kj])
    return out[:, :, 1:1 + H, 1:1 + W]


def transformer_forward(V, K, Q, *, tq_max=256, tk_max=256):
    """Matches Transformer.forward(V, K, Q) -> (S, T_lv3), NCHW in/out."""
    B, _, Hq, Wq = Q.shape

    Q_unfold = unfold3x3(Q).astype(jnp.float32)      # (B, C*9, HWq)
    K_unfold = unfold3x3(K).astype(jnp.float32)      # (B, C*9, HWk), no transpose

    R_star, R_arg = sim_argmax(K_unfold, Q_unfold, tk_max=tk_max, tq_max=tq_max)

    V_unfold = unfold3x3(V).astype(jnp.float32)      # (B, Cv*9, HWk)
    # self.bis(V_unfold, 2, R_lv3_star_arg): gather chosen K position per Q pos
    T_unfold = jnp.take_along_axis(V_unfold, R_arg[:, None, :], axis=2)
    T_lv3 = fold3x3(T_unfold, Hq, Wq) / jnp.float32(9.0)

    S = R_star.reshape(B, 1, Hq, Wq)
    return S, T_lv3


# ------------------------------ driver ---------------------------------------
if __name__ == "__main__":
    key = jax.random.PRNGKey(0)
    kv, kk, kq = jax.random.split(key, 3)
    B, C, H, W = 2, 4, 16, 16        # V/K/Q share spatial size; HWq = HWk = 256
    V = jax.random.normal(kv, (B, C, H, W), dtype=jnp.float32)
    K = jax.random.normal(kk, (B, C, H, W), dtype=jnp.float32)
    Q = jax.random.normal(kq, (B, C, H, W), dtype=jnp.float32)

    # 128-wide tiles here so the multi-tile online max/argmax path is exercised
    # (2 q-tiles x 2 k-tiles per batch).  Defaults (256) target v6e/v7x sizes.
    fwd = jax.jit(functools.partial(transformer_forward, tq_max=128, tk_max=128))
    S, T = fwd(V, K, Q)
    jax.block_until_ready((S, T))
    assert S.shape == (B, 1, H, W) and T.shape == (B, C, H, W)

    # Pure-JAX f32 reference for the similarity max (loose tol: bf16 MXU inputs).
    Qu = unfold3x3(Q).astype(jnp.float32)
    Ku = unfold3x3(K).astype(jnp.float32)
    Kn = Ku / jnp.maximum(jnp.sqrt(jnp.sum(Ku * Ku, axis=1, keepdims=True)), 1e-12)
    Qn = Qu / jnp.maximum(jnp.sqrt(jnp.sum(Qu * Qu, axis=1, keepdims=True)), 1e-12)
    S_ref = jnp.max(jnp.einsum("bfk,bfq->bkq", Kn, Qn), axis=1).reshape(B, 1, H, W)
    err = float(jnp.max(jnp.abs(S - S_ref)))
    assert err < 2e-2, err

    print("KERNEL_OK")
</pallas_src>

<mosaic_0001>
module attributes {stable_mosaic.version = 11 : i64} {
  func.func @_sim_argmax_kernel(%arg0: i32, %arg1: i32, %arg2: i32, %arg3: memref<1x36x128xf32, #tpu.memory_space<vmem>>, %arg4: memref<1x36x128xf32, #tpu.memory_space<vmem>>, %arg5: memref<1x1x128xf32, #tpu.memory_space<vmem>>, %arg6: memref<1x1x128xi32, #tpu.memory_space<vmem>>, %arg7: memref<1x128xf32, #tpu.memory_space<vmem>>, %arg8: memref<1x128xi32, #tpu.memory_space<vmem>>) attributes {dimension_semantics = [#tpu.dimension_semantics<parallel>, #tpu.dimension_semantics<parallel>, #tpu.dimension_semantics<arbitrary>], iteration_bounds = array<i64: 2, 2, 2>, scalar_prefetch = 0 : i64, scratch_operands = 2 : i64, tpu.core_type = #tpu.core_type<tc>, window_params = [{transform_indices = @transform_0, window_bounds = array<i64: 1, 36, 128>}, {transform_indices = @transform_1, window_bounds = array<i64: 1, 36, 128>}, {transform_indices = @transform_2, window_bounds = array<i64: 1, 1, 128>}, {transform_indices = @transform_3, window_bounds = array<i64: 1, 1, 128>}]} {
    %c0_i32 = arith.constant 0 : i32
    %0 = arith.cmpi eq, %arg2, %c0_i32 : i32
    %1 = arith.extui %0 : i1 to i32
    %c0_i32_0 = arith.constant 0 : i32
    %2 = arith.cmpi ne, %1, %c0_i32_0 : i32
    scf.if %2 {
      %cst_21 = arith.constant 0xFF800000 : f32
      %44 = vector.broadcast %cst_21 : f32 to vector<1x128xf32>
      %c0_22 = arith.constant 0 : index
      %c0_23 = arith.constant 0 : index
      %45 = vector.load %arg7[%c0_22, %c0_23] : memref<1x128xf32, #tpu.memory_space<vmem>>, vector<1x128xf32>
      tpu.vector_store %arg7[%c0_22, %c0_23], %44 {strides = array<i32>} : memref<1x128xf32, #tpu.memory_space<vmem>>, vector<1x128xf32>,
      %c0_i32_24 = arith.constant 0 : i32
      %46 = vector.broadcast %c0_i32_24 : i32 to vector<1x128xi32>
      %c0_25 = arith.constant 0 : index
      %c0_26 = arith.constant 0 : index
      %47 = vector.load %arg8[%c0_25, %c0_26] : memref<1x128xi32, #tpu.memory_space<vmem>>, vector<1x128xi32>
      tpu.vector_store %arg8[%c0_25, %c0_26], %46 {strides = array<i32>} : memref<1x128xi32, #tpu.memory_space<vmem>>, vector<1x128xi32>,
    } else {
    }
    %c0 = arith.constant 0 : index
    %c0_1 = arith.constant 0 : index
    %c0_2 = arith.constant 0 : index
    %3 = vector.load %arg3[%c0, %c0_1, %c0_2] : memref<1x36x128xf32, #tpu.memory_space<vmem>>, vector<1x36x128xf32>
    %4 = vector.shape_cast %3 : vector<1x36x128xf32> to vector<36x128xf32>
    %c0_3 = arith.constant 0 : index
    %c0_4 = arith.constant 0 : index
    %c0_5 = arith.constant 0 : index
    %5 = vector.load %arg4[%c0_3, %c0_4, %c0_5] : memref<1x36x128xf32, #tpu.memory_space<vmem>>, vector<1x36x128xf32>
    %6 = vector.shape_cast %5 : vector<1x36x128xf32> to vector<36x128xf32>
    %7 = arith.mulf %4, %4 : vector<36x128xf32>
    %cst = arith.constant dense<0.000000e+00> : vector<128xf32>
    %8 = vector.multi_reduction <add>, %7, %cst [0] : vector<36x128xf32> to vector<128xf32>
    %9 = vector.shape_cast %8 : vector<128xf32> to vector<1x128xf32>
    %cst_6 = arith.constant 1.000000e-24 : f32
    %10 = vector.broadcast %cst_6 : f32 to vector<1x128xf32>
    %11 = arith.maximumf %9, %10 : vector<1x128xf32>
    %12 = math.rsqrt %11 : vector<1x128xf32>
    %13 = vector.broadcast %12 : vector<1x128xf32> to vector<36x128xf32>
    %14 = arith.mulf %4, %13 : vector<36x128xf32>
    %15 = arith.truncf %14 : vector<36x128xf32> to vector<36x128xbf16>
    %16 = arith.truncf %6 : vector<36x128xf32> to vector<36x128xbf16>
    %cst_7 = arith.constant dense<0.000000e+00> : vector<128x128xf32>
    %17 = tpu.matmul %15, %16, %cst_7 {dimension_numbers = #tpu.dot_dimension_numbers<[0], [0], [1], [1], [0, 1, 1, 1], [], []>} : vector<36x128xbf16>, vector<36x128xbf16>, vector<128x128xf32> -> vector<128x128xf32>
    %c128_i32 = arith.constant 128 : i32
    %18 = arith.muli %arg2, %c128_i32 : i32
    %19 = tpu.iota {dimensions = array<i32: 0>} : vector<128x128xi32>
    %20 = vector.broadcast %18 : i32 to vector<128x128xi32>
    %21 = arith.addi %20, %19 : vector<128x128xi32>
    %c256_i32 = arith.constant 256 : i32
    %22 = vector.broadcast %c256_i32 : i32 to vector<128x128xi32>
    %23 = arith.cmpi slt, %21, %22 : vector<128x128xi32>
    %cst_8 = arith.constant 0xFF800000 : f32
    %24 = vector.broadcast %cst_8 : f32 to vector<128x128xf32>
    %25 = arith.select %23, %17, %24 : vector<128x128xi1>, vector<128x128xf32>
    %cst_9 = arith.constant dense<0xFF800000> : vector<128xf32>
    %26 = vector.multi_reduction <maximumf>, %25, %cst_9 [0] : vector<128x128xf32> to vector<128xf32>
    %27 = vector.shape_cast %26 : vector<128xf32> to vector<1x128xf32>
    %28 = vector.broadcast %27 : vector<1x128xf32> to vector<128x128xf32>
    %29 = arith.cmpf oeq, %25, %28 : vector<128x128xf32>
    %c1073741824_i32 = arith.constant 1073741824 : i32
    %30 = vector.broadcast %c1073741824_i32 : i32 to vector<128x128xi32>
    %31 = arith.select %29, %21, %30 : vector<128x128xi1>, vector<128x128xi32>
    %cst_10 = arith.constant dense<2147483647> : vector<128xi32>
    %32 = vector.multi_reduction <minsi>, %31, %cst_10 [0] : vector<128x128xi32> to vector<128xi32>
    %33 = vector.shape_cast %32 : vector<128xi32> to vector<1x128xi32>
    %c0_11 = arith.constant 0 : index
    %c0_12 = arith.constant 0 : index
    %34 = vector.load %arg7[%c0_11, %c0_12] : memref<1x128xf32, #tpu.memory_space<vmem>>, vector<1x128xf32>
    %35 = arith.cmpf ogt, %27, %34 : vector<1x128xf32>
    %c0_13 = arith.constant 0 : index
    %c0_14 = arith.constant 0 : index
    %36 = vector.load %arg8[%c0_13, %c0_14] : memref<1x128xi32, #tpu.memory_space<vmem>>, vector<1x128xi32>
    %37 = arith.select %35, %33, %36 : vector<1x128xi1>, vector<1x128xi32>
    %c0_15 = arith.constant 0 : index
    %c0_16 = arith.constant 0 : index
    %38 = vector.load %arg8[%c0_15, %c0_16] : memref<1x128xi32, #tpu.memory_space<vmem>>, vector<1x128xi32>
    tpu.vector_store %arg8[%c0_15, %c0_16], %37 {strides = array<i32>} : memref<1x128xi32, #tpu.memory_space<vmem>>, vector<1x128xi32>,
    %39 = arith.select %35, %27, %34 : vector<1x128xi1>, vector<1x128xf32>
    %c0_17 = arith.constant 0 : index
    %c0_18 = arith.constant 0 : index
    %40 = vector.load %arg7[%c0_17, %c0_18] : memref<1x128xf32, #tpu.memory_space<vmem>>, vector<1x128xf32>
    tpu.vector_store %arg7[%c0_17, %c0_18], %39 {strides = array<i32>} : memref<1x128xf32, #tpu.memory_space<vmem>>, vector<1x128xf32>,
    %c1_i32 = arith.constant 1 : i32
    %41 = arith.cmpi eq, %arg2, %c1_i32 : i32
    %42 = arith.extui %41 : i1 to i32
    %cst_19 = arith.constant 1.000000e-24 : f32
    %c0_i32_20 = arith.constant 0 : i32
    %43 = arith.cmpi ne, %42, %c0_i32_20 : i32
    scf.if %43 {
      %44 = arith.mulf %6, %6 : vector<36x128xf32>
      %cst_21 = arith.constant dense<0.000000e+00> : vector<128xf32>
      %45 = vector.multi_reduction <add>, %44, %cst_21 [0] : vector<36x128xf32> to vector<128xf32>
      %46 = vector.shape_cast %45 : vector<128xf32> to vector<1x128xf32>
      %c0_22 = arith.constant 0 : index
      %c0_23 = arith.constant 0 : index
      %47 = vector.load %arg7[%c0_22, %c0_23] : memref<1x128xf32, #tpu.memory_space<vmem>>, vector<1x128xf32>
      %48 = vector.broadcast %cst_19 : f32 to vector<1x128xf32>
      %49 = arith.maximumf %46, %48 : vector<1x128xf32>
      %50 = math.rsqrt %49 : vector<1x128xf32>
      %51 = arith.mulf %47, %50 : vector<1x128xf32>
      %c0_24 = arith.constant 0 : index
      %c0_25 = arith.constant 0 : index
      %c0_26 = arith.constant 0 : index
      %52 = vector.load %arg5[%c0_24, %c0_25, %c0_26] : memref<1x1x128xf32, #tpu.memory_space<vmem>>, vector<1x1x128xf32>
      %53 = vector.shape_cast %52 : vector<1x1x128xf32> to vector<1x128xf32>
      %54 = vector.shape_cast %51 : vector<1x128xf32> to vector<1x1x128xf32>
      tpu.vector_store %arg5[%c0_24, %c0_25, %c0_26], %54 {strides = array<i32>} : memref<1x1x128xf32, #tpu.memory_space<vmem>>, vector<1x1x128xf32>,
      %c0_27 = arith.constant 0 : index
      %c0_28 = arith.constant 0 : index
      %55 = vector.load %arg8[%c0_27, %c0_28] : memref<1x128xi32, #tpu.memory_space<vmem>>, vector<1x128xi32>
      %c0_29 = arith.constant 0 : index
      %c0_30 = arith.constant 0 : index
      %c0_31 = arith.constant 0 : index
      %56 = vector.load %arg6[%c0_29, %c0_30, %c0_31] : memref<1x1x128xi32, #tpu.memory_space<vmem>>, vector<1x1x128xi32>
      %57 = vector.shape_cast %56 : vector<1x1x128xi32> to vector<1x128xi32>
      %58 = vector.shape_cast %55 : vector<1x128xi32> to vector<1x1x128xi32>
      tpu.vector_store %arg6[%c0_29, %c0_30, %c0_31], %58 {strides = array<i32>} : memref<1x1x128xi32, #tpu.memory_space<vmem>>, vector<1x1x128xi32>,
    } else {
    }
    return
  }
  func.func @transform_0(%arg0: i32, %arg1: i32, %arg2: i32) -> (i32, i32, i32) {
    %c0_i32 = arith.constant 0 : i32
    %c0_i32_0 = arith.constant 0 : i32
    return %arg0, %c0_i32, %arg2 : i32, i32, i32
  }
  func.func @transform_1(%arg0: i32, %arg1: i32, %arg2: i32) -> (i32, i32, i32) {
    %c0_i32 = arith.constant 0 : i32
    %c0_i32_0 = arith.constant 0 : i32
    return %arg0, %c0_i32, %arg1 : i32, i32, i32
  }
  func.func @transform_2(%arg0: i32, %arg1: i32, %arg2: i32) -> (i32, i32, i32) {
    %c0_i32 = arith.constant 0 : i32
    %c0_i32_0 = arith.constant 0 : i32
    return %arg0, %c0_i32, %arg1 : i32, i32, i32
  }
  func.func @transform_3(%arg0: i32, %arg1: i32, %arg2: i32) -> (i32, i32, i32) {
    %c0_i32 = arith.constant 0 : i32
    %c0_i32_0 = arith.constant 0 : i32
    return %arg0, %c0_i32, %arg1 : i32, i32, i32
  }
}

</mosaic_0001>

<bundles_post_ra>
// kernel: transformer_forward.1
= control target key start
LH: loop header
LB: loop body
LE: loop exit
PB: predicated region body
PF: predicated region fallthrough
CT: control target
= control target key end

     0   :  { %s1148_s12 = smov 0   ;;  %s1150_s13 = smov 0   ;;  %s1556_s0 = inlined_call_operand.vmem [shape: f32[2,36,256], index: 0, kind: input, shape index: {}]   ;;  %s1557_s1 = inlined_call_operand.vmem [shape: f32[2,36,256], index: 1, kind: input, shape index: {}]   ;;  %s1558_s2 = inlined_call_operand.vmem [shape: f32[2,1,256], index: 2, kind: output, shape index: {0}]   ;;  %s1559_s3 = inlined_call_operand.vmem [shape: s32[2,1,256], index: 3, kind: output, shape index: {1}]  }
   0x1   :  { %s1152_s14 = smov 0   ;;  %s1154_s15 = smov 0  }
   0x2   :  { %s1156_s16 = smov 0   ;;  %s1158_s17 = smov 0  }
   0x3   :  { %s1160_s18 = smov 0   ;;  %s1162_s19 = smov 0  }
   0x4   :  { %s1164_s20 = smov 0   ;;  %s1166_s21 = smov 0  }
   0x5   :  { %s1168_s22 = smov 0  }
   0x6 LB: > { %s26_s23 = sadd.s32 1, %s1112_s19  ;;  %s29_s24 = sadd.s32 1, %s1116_s20  ;;  %s1124_s22 = sphi %s1168_s22, %s14_s22   ;;  %s1120_s21 = sphi %s1166_s21, %s1576_s21   ;;  %s1116_s20 = sphi %s1164_s20, %s1575_s20   ;;  %s1112_s19 = sphi %s1162_s19, %s1574_s19   ;;  %s1108_s18 = sphi %s1160_s18, %s1573_s18   ;;  %s1104_s17 = sphi %s1158_s17, %s1572_s17   ;;  %s1100_s16 = sphi %s1156_s16, %s1571_s16   ;;  %s1096_s15 = sphi %s1154_s15, %s1570_s15   ;;  %s1092_s14 = sphi %s1152_s14, %s1569_s14   ;;  %s1088_s13 = sphi %s1150_s13, %s1568_s13   ;;  %s1084_s12 = sphi %s1148_s12, %s1567_s12  }
   0x7   : > { %p27_p0 = scmp.ge.s32.totalorder %s26_s23, 2  ;;  %p49_p1 = scmp.ne.s32.totalorder %s1096_s15, %s1092_s14 }
   0x8   : > { %p50_p2 = scmp.eq.s32.totalorder %s1124_s22, 0  ;;  %s33_s25 = sadd.s32 1, %s1120_s21 }
   0x9   : > { %s1578_s23 = smov (%p27_p0, %s26_s23), 0  ;;  %s1580_s24 = smov (!%p27_p0, %s29_s24), %s1116_s20 }
   0xa   : > { %p31_p3 = scmp.ge.s32.totalorder %s1580_s24, 2  ;;  %p1212_p4 = por %p50_p2, %p49_p1 }
   0xb   : > { %p77_p5 = scmp.ne.s32.totalorder %s1088_s13, %s1084_s12  ;;  %s38_s28 = ssub.s32 %s1112_s19, %s1578_s23 }
   0xc   : > { %s1582_s24 = smov (%p31_p3, %s1580_s24), 0  ;;  %s1584_s25 = smov (!%p31_p3, %s33_s25), %s1120_s21 }
   0xd   : > { %p1221_p6 = por %p77_p5, %p50_p2  ;;  %p35_p7 = scmp.ge.s32.totalorder %s1584_s25, 2 }
   0xe   : > { %s66_s29 = ssub.s32 %s1116_s20, %s1582_s24  ;;  %s42_s30 = sadd.s32 1, %s1096_s15 }
   0xf   : > { %s1586_s25 = smov (%p35_p7, %s1584_s25), 0  ;;  %s70_s5 = sadd.s32 1, %s1088_s13 }
  0x10   : > { %1564 = sst [smem:[#allocation6_spill]] %s1586_s25  ;;  %s37_s4 = ssub.s32 %s1120_s21, %s1586_s25 }
  0x11   : > { %s39_s6 = sor.u32 %s38_s28, %s37_s4  ;;  %s67_s7 = sor.u32 %s66_s29, %s37_s4 }
  0x12   : > { %p40_p8 = scmp.eq.s32.totalorder %s39_s6, 0  ;;  %p68_p9 = scmp.eq.s32.totalorder %s67_s7, 0 }
  0x13   : > { %p877_p10 = scmp.ge.s32.totalorder %s1124_s22, 8 }
  0x14   : > { %s1236_s8 = scalar_select %p40_p8, %s1096_s15, %s42_s30  }
  0x15   : > { %s1239_s9 = scalar_select %p68_p9, %s1088_s13, %s70_s5  }
  0x16   : > { %159 = sbr.rel (%p877_p10) target bundleno = 49 (0x31), region = 16 }
  0x1d   : > { %162 = sbr.rel (!%p1212_p4) target bundleno = 39 (0x27), region = 20  ;;  %s164_s10 = sand.u32 (%p1212_p4), 1, %s1096_s15  }
  0x1e   : > { %s938_s11 = smul.u32 (%p1212_p4), 10, %s1120_s21 }
  0x1f   : > { %s937_s25 = smul.u32 (%p1212_p4), 40, %s164_s10 }
  0x20   : > { %s168_s28 = sadd.s32 (%p1212_p4), %s1112_s19, %s938_s11 }
  0x21   : > { %s878_s29 = sshll.u32 (%p1212_p4), %s168_s28, 3  ;;  %s166_s5 = scalar_lea.vmem (%p1212_p4), [#allocation4], %s937_s25 }
  0x22   : > { %s170_s30 = scalar_lea.vmem (%p1212_p4), %s1556_s0, %s878_s29 }
  0x23   : > { %v206_v0 = vld [vmem:[%s170_s30] sm:$0xff] (%p1212_p4)  ;;  %v208_v1 = vld [vmem:[%s170_s30 + $0x10] sm:$0xff] (%p1212_p4) }
  0x24   : > { %v210_v2 = vld [vmem:[%s170_s30 + $0x20] sm:$0xff]  ;;  %207 = vst [vmem:[%s166_s5] sm:$0xff] %v206_v0  ;;  %209 = vst [vmem:[%s166_s5 + $0x8] sm:$0xff] %v208_v1  ;;  %v212_v3 = vld [vmem:[%s170_s30 + $0x30] sm:$0xff] }
  0x25   : > { %211 = vst [vmem:[%s166_s5 + $0x10] sm:$0xff] %v210_v2  ;;  %v214_v4 = vld [vmem:[%s170_s30 + $0x40] sm:$0xff]  ;;  %213 = vst [vmem:[%s166_s5 + $0x18] sm:$0xff] %v212_v3 }
  0x26   : > { %215 = vst [vmem:[%s166_s5 + $0x20] sm:$0xff] %v214_v4 }
  0x27 PF: > { %221 = sbr.rel (!%p1221_p6) target bundleno = 49 (0x31), region = 58  ;;  %s223_s26 = sand.u32 (%p1221_p6), 1, %s1088_s13  }
  0x28   : > { %s940_s7 = smul.u32 (%p1221_p6), 10, %s1120_s21 }
  0x29   : > { %s939_s10 = smul.u32 (%p1221_p6), 40, %s223_s26 }
  0x2a   : > { %s227_s11 = sadd.s32 (%p1221_p6), %s1116_s20, %s940_s7 }
  0x2b   : > { %s879_s28 = sshll.u32 (%p1221_p6), %s227_s11, 3  ;;  %s225_s6 = scalar_lea.vmem (%p1221_p6), [#allocation5], %s939_s10 }
  0x2c   : > { %s229_s4 = scalar_lea.vmem (%p1221_p6), %s1557_s1, %s879_s28 }
  0x2d   : > { %v265_v5 = vld [vmem:[%s229_s4] sm:$0xff] (%p1221_p6)  ;;  %v267_v6 = vld [vmem:[%s229_s4 + $0x10] sm:$0xff] (%p1221_p6) }
  0x2e   : > { %v269_v7 = vld [vmem:[%s229_s4 + $0x20] sm:$0xff]  ;;  %266 = vst [vmem:[%s225_s6] sm:$0xff] %v265_v5  ;;  %268 = vst [vmem:[%s225_s6 + $0x8] sm:$0xff] %v267_v6  ;;  %v271_v8 = vld [vmem:[%s229_s4 + $0x30] sm:$0xff] }
  0x2f   : > { %270 = vst [vmem:[%s225_s6 + $0x10] sm:$0xff] %v269_v7  ;;  %v273_v9 = vld [vmem:[%s229_s4 + $0x40] sm:$0xff]  ;;  %272 = vst [vmem:[%s225_s6 + $0x18] sm:$0xff] %v271_v8 }
  0x30   : > { %274 = vst [vmem:[%s225_s6 + $0x20] sm:$0xff] %v273_v9 }
  0x31 PF: > { %p880_p11 = scmp.ge.s32.totalorder %s1124_s22, 1  ;;  %p279_p12 = scmp.lt.s32.totalorder %s1124_s22, 9 }
  0x33   : > { %p280_p13 = pnand %p880_p11, %p279_p12 }
  0x34   : > { %s286_s27 = sand.u32 (!%p280_p13), 1, %s1092_s14   ;;  %s293_s30 = sand.u32 (!%p280_p13), 1, %s1084_s12  }
  0x35   : > { %283 = sbr.rel (%p280_p13) target bundleno = 525 (0x20d), region = 96  ;;  %p329_p0 = scmp.lt.s32.totalorder (!%p280_p13), %s1108_s18, 1 }
  0x36   : > { %s941_s5 = smul.u32 (!%p280_p13), 40, %s286_s27  ;;  %p331_p1 = scmp.lt.s32.totalorder (!%p280_p13), %s1104_s17, 1 }
  0x37   : > { %s942_s26 = smul.u32 (!%p280_p13), 40, %s293_s30  ;;  %p883_p2 = scmp.ne.s32.totalorder (!%p280_p13), %s1100_s16, 0 }
  0x38   : > { %s288_s12 = scalar_lea.vmem (!%p280_p13), [#allocation4], %s941_s5 }
  0x39   : > { %s1276_s6 = scalar_lea.vmem (!%p280_p13), [#allocation5], %s942_s26 }
  0x3c   : > { %s1588_s18 = smov (!%p329_p0, %s1108_s18), 1  ;;  %s1590_s17 = smov (!%p331_p1, %s1104_s17), 1 }
  0x3d   : > { %s881_s7 = sshll.u32 %s1588_s18, 1  ;;  %347 = sbr.rel (%p883_p2) target bundleno = 68 (0x44), region = 108  ;;  %v1126_v10 = vmov (!%p883_p2), -inf   ;;  %v1127_v11 = vmov (!%p883_p2), 0  }
  0x3e   : > { %s1266_s10 = sadd.s32 %s881_s7, %s1590_s17  ;;  %348 = vst [vmem:[#allocation2] sm:$0x1] (!%p883_p2), %v1126_v10  ;;  %349 = vst [vmem:[#allocation3] sm:$0x1] (!%p883_p2), %v1127_v11 }
  0x3f   : > { %s335_s25 = scalar_lea.vmem %s1558_s2, %s1266_s10  ;;  %s342_s14 = scalar_lea.vmem %s1559_s3, %s1266_s10 }
  0x44 PF: > { %v350_v12 = vld [vmem:[%s288_s12] sm:$0xff]  ;;  %v351_v13 = vld [vmem:[%s288_s12 + $0x8] sm:$0xff]  ;;  %v352_v14 = vld [vmem:[%s288_s12 + $0x10] sm:$0xff]  ;;  %vm1561_vm0 = vcmask 1043456   ;;  %vm431_vm1 = vcmask 1041408   ;;  %vm406_vm2 = vcmask 293888   ;;  %v533_v60 = vlaneseq }
  0x45   : > { %v353_v15 = vld [vmem:[%s288_s12 + $0x18] sm:$0xff]  ;;  %v354_v16 = vld [vmem:[%s288_s12 + $0x20] sm:$0xf]  ;;  %v360_v17 = vmul.f32 %v350_v12, %v350_v12  ;;  %v361_v18 = vmul.f32 %v351_v13, %v351_v13  ;;  %v362_v19 = vmul.f32 %v352_v14, %v352_v14  ;;  %v1280_v20 = vld [vmem:[%s1276_s6] sm:$0xff]  ;;  %s892_s17 = sshll.u32 %s1100_s16, 7  ;;  %p893_p3 = scmp.ne.s32.totalorder %s1100_s16, 1 }
  0x46   : > { %v364_v21 = vmul.f32 %v354_v16, %v354_v16  ;;  %v1283_v22 = vld [vmem:[%s1276_s6 + $0x8] sm:$0xff]  ;;  %v1286_v23 = vld [vmem:[%s1276_s6 + $0x10] sm:$0xff]  ;;  %v1289_v24 = vld [vmem:[%s1276_s6 + $0x18] sm:$0xff]  ;;  %v363_v25 = vmul.f32 %v353_v15, %v353_v15  ;;  %v1309_v61 = vshrl.u32 %v533_v60, 7  ;;  %v1314_v0 = vstv %s892_s17 }
  0x47   : > { %v365_v26 = vadd.f32 %v361_v18, %v360_v17  ;;  %v387_v27 = vpack.c.bf16 %v1283_v22, %v1280_v20  ;;  %v388_v28 = vpack.c.bf16 %v1289_v24, %v1286_v23  ;;  %v1297_v34 = vld [vmem:[%s1276_s6 + $0x20] sm:$0xf] }
  0x48   : > { %v369_v30 = vsel %vm1561_vm0, %v364_v21, 0.0  ;;  %v389_v36 = vpack.c.bf16 %v1297_v34, %v1297_v34  ;;  %v536_v62 = vadd.s32 16, %v1309_v61  ;;  %v540_v63 = vadd.s32 48, %v1309_v61 }
  0x49   : > { %v366_v29 = vadd.f32 %v365_v26, %v362_v19  ;;  %907 = vmatprep.subr.bf16.mxu0 %v387_v27  ;;  %929 = vmatprep.subr.bf16.mxu1 %v387_v27  ;;  %v538_v1 = vadd.s32 32, %v1309_v61  ;;  %v537_v3 = vadd.s32 24, %v1309_v61  ;;  %v535_v4 = vadd.s32 8, %v1309_v61 }
  0x4a   : > { %908 = vmatpush3.bf16.msra.mxu0 %v387_v27  ;;  %932 = vmatpush3.bf16.msra.mxu1 %v387_v27  ;;  %v433_v38 = vsel %vm431_vm1, %v389_v36, 0  ;;  %v541_v5 = vadd.s32 56, %v1309_v61  ;;  %v539_v7 = vadd.s32 40, %v1309_v61  ;;  %v1322_v8 = vadd.s32 %v1314_v0, %v536_v62 }
  0x4b   : > { %v367_v31 = vadd.f32 %v366_v29, %v363_v25  ;;  %909 = vmatprep.subr.bf16.mxu0 %v388_v28  ;;  %930 = vmatprep.subr.bf16.mxu1 %v388_v28  ;;  %v1325_v10 = vadd.s32 %v1314_v0, %v540_v63  ;;  %v1329_v11 = vadd.s32 %v1314_v0, %v1309_v61  ;;  %v544_v18 = vadd.s32 80, %v1309_v61 }
  0x4c   : > { %v1344_v17 = vadd.s32 %v1314_v0, %v539_v7  ;;  %vm569_vm3 = vcmp.lt.s32.totalorder %v1322_v8, 256  ;;  %v542_v19 = vadd.s32 64, %v1309_v61  ;;  %v545_v25 = vadd.s32 88, %v1309_v61 }
  0x4d   : > { %v370_v32 = vadd.f32 %v369_v30, %v367_v31  ;;  %vm573_vm4 = vcmp.lt.s32.totalorder %v1325_v10, 256  ;;  %vm567_vm5 = vcmp.lt.s32.totalorder %v1329_v11, 256  ;;  %v543_v29 = vadd.s32 72, %v1309_v61 }
  0x4e   : > { %910 = vmatpush3.bf16.msra.mxu0 %v388_v28  ;;  %933 = vmatpush3.bf16.msra.mxu1 %v388_v28  ;;  %vm572_vm10 = vcmp.lt.s32.totalorder %v1344_v17, 256 }
  0x4f   : > { %v371_v33 = vrot.slane %v370_v32, 4  ;;  %935 = vmatprep.subr.msk.bf16.mxu0 %vm431_vm1, %v389_v36  ;;  %936 = vmatprep.subr.msk.bf16.mxu1 %vm431_vm1, %v389_v36 }
  0x51   : > { %v372_v35 = vadd.f32 %v371_v33, %v370_v32 }
  0x52   : > { %912 = vmatpush3.bf16.msra.mxu0 %v433_v38  ;;  %934 = vmatpush3.bf16.msra.mxu1 %v433_v38 }
  0x53   : > { %v373_v37 = vrot.slane %v372_v35, 2 }
  0x55   : > { %v374_v39 = vadd.f32 %v373_v37, %v372_v35  ;;  %v1369_v35 = vadd.s32 %v1314_v0, %v544_v18 }
  0x57   : > { %v375_v40 = vrot.slane %v374_v39, 1  ;;  %vm577_vm11 = vcmp.lt.s32.totalorder %v1369_v35, 256 }
  0x59   : > { %v376_v41 = vadd.f32 %v375_v40, %v374_v39  ;;  %v1378_v40 = vadd.s32 %v1314_v0, %v542_v19 }
  0x5b   : > { %v377_v42 = vmax.f32 %v376_v41, 1e-24  ;;  %vm575_vm12 = vcmp.lt.s32.totalorder %v1378_v40, 256 }
  0x5d   : > { %1034 = vrsqrt.f32 %v377_v42 }
  0x67   : > { %v1035_v43 = vpop.eup %1034 }
  0x68   : > { %v379_v44 = vmul.f32 %v1035_v43, %v350_v12  ;;  %v380_v45 = vmul.f32 %v1035_v43, %v351_v13  ;;  %v381_v46 = vmul.f32 %v1035_v43, %v352_v14  ;;  %v382_v47 = vmul.f32 %v1035_v43, %v353_v15 }
  0x69   : > { %v383_v50 = vmul.f32 %v1035_v43, %v354_v16  ;;  %v1332_v13 = vadd.s32 %v1314_v0, %v538_v1  ;;  %v1335_v14 = vadd.s32 %v1314_v0, %v537_v3  ;;  %v1338_v15 = vadd.s32 %v1314_v0, %v535_v4 }
  0x6a   : > { %v384_v48 = vpack.c.bf16 %v380_v45, %v379_v44  ;;  %v385_v49 = vpack.c.bf16 %v382_v47, %v381_v46  ;;  %v1341_v16 = vadd.s32 %v1314_v0, %v541_v5  ;;  %v1389_v44 = vadd.s32 %v1314_v0, %v545_v25 }
  0x6b   : > { %v386_v51 = vpack.c.bf16 %v383_v50, %v383_v50  ;;  %vm571_vm6 = vcmp.lt.s32.totalorder %v1332_v13, 256  ;;  %vm570_vm7 = vcmp.lt.s32.totalorder %v1335_v14, 256  ;;  %vm568_vm8 = vcmp.lt.s32.totalorder %v1338_v15, 256 }
  0x6c   : > { %390 = vxpose.xlu0.c.b16.start [1/3] (short) %v384_v48, 128  ;;  %vm574_vm9 = vcmp.lt.s32.totalorder %v1341_v16, 256  ;;  %v1394_v46 = vadd.s32 %v1314_v0, %v543_v29  ;;  %v548_v47 = vadd.s32 112, %v1309_v61  ;;  %v546_v48 = vadd.s32 96, %v1309_v61 }
  0x6d   : > { %vm578_vm13 = vcmp.lt.s32.totalorder %v1389_v44, 256  ;;  %v549_v50 = vadd.s32 120, %v1309_v61 }
  0x6e   : > { %vm576_vm14 = vcmp.lt.s32.totalorder %v1394_v46, 256  ;;  %v563_v62 = vadd.s32 %v1314_v0, %v546_v48 }
  0x70   : > { %391 = vxpose.xlu0.c.b16.cont [2/3] (short) %v385_v49, 128  ;;  %vm579_vm1 = vcmp.lt.s32.totalorder %v563_v62, 256 }
  0x74   : > { %392 = vxpose.xlu0.c.b16.end [3/3] (short) %v386_v51, 128 }
  0xd2   : > { %v398_v52 = vpop.trf.xlu0 }
  0xd3   : > { %913 = vmatprep.mubr.msk.bf16.mxu0 %vm406_vm2, %v398_v52 }
  0xd6   : > { %v399_v53 = vpop.trf.xlu0 }
  0xd7   : > { %914 = vmatmul.mubr.msk.bf16.vlgmr.msra.gmra.mrb[0].mxu0 %vm406_vm2, %v399_v53  ;;  %v547_v53 = vadd.s32 104, %v1309_v61 }
  0xd9   : > { %v564_v4 = vadd.s32 %v1314_v0, %v547_v53 }
  0xda   : > { %v400_v54 = vpop.trf.xlu0 }
  0xdb   : > { %917 = vmatprep.mubr.msk.bf16.mxu0 %vm406_vm2, %v400_v54 }
  0xde   : > { %v401_v55 = vpop.trf.xlu0 }
  0xdf   : > { %918 = vmatmul.mubr.msk.bf16.gmra.mrb[4].mxu0 %vm406_vm2, %v401_v55 }
  0xe2   : > { %v402_v56 = vpop.trf.xlu0 }
  0xe3   : > { %921 = vmatprep.mubr.msk.bf16.mxu1 %vm406_vm2, %v402_v56 }
  0xe6   : > { %v403_v57 = vpop.trf.xlu0 }
  0xe7   : > { %922 = vmatmul.mubr.msk.bf16.vlgmr.msra.gmra.mrb[0].mxu1 %vm406_vm2, %v403_v57  ;;  %v1408_v57 = vadd.s32 %v1314_v0, %v548_v47 }
  0xe9   : > { %vm581_vm15 = vcmp.lt.s32.totalorder %v1408_v57, 256 }
  0xea   : > { %v404_v58 = vpop.trf.xlu0 }
  0xeb   : > { %925 = vmatprep.mubr.msk.bf16.mxu1 %vm406_vm2, %v404_v58 }
  0xee   : > { %v405_v59 = vpop.trf.xlu0 }
  0xef   : > { %926 = vmatmul.mubr.msk.bf16.gmra.mrb[4].mxu1 %vm406_vm2, %v405_v59 }
 0x1aa   : > { %v915_v2 = vpop.f32.mrb[0].mxu0 }
 0x1ab   : > { %v469_v6 = vpop.f32.mrb[1].mxu0  ;;  %v1356_v26 = vsel %vm569_vm3, %v915_v2, -inf  ;;  %v566_v2 = vadd.s32 %v1314_v0, %v549_v50  ;;  %vm580_vm3 = vcmp.lt.s32.totalorder %v564_v4, 256 }
 0x1ac   : > { %v916_v9 = vpop.f32.mrb[2].mxu0  ;;  %v1362_v30 = vsel %vm567_vm5, %v469_v6, -inf }
 0x1ad   : > { %v472_v12 = vpop.f32.mrb[3].mxu0  ;;  %v1371_v36 = vsel %vm570_vm7, %v916_v9, -inf  ;;  %vm582_vm2 = vcmp.lt.s32.totalorder %v566_v2, 256 }
 0x1ae   : > { %v1382_v41 = vsel %vm568_vm8, %v472_v12, -inf }
 0x1b2   : > { %v919_v21 = vpop.f32.mrb[4].mxu0 }
 0x1b3   : > { %v1358_v27 = vsel %vm573_vm4, %v919_v21, -inf  ;;  %v485_v28 = vpop.f32.mrb[5].mxu0 }
 0x1b4   : > { %v601_v31 = vmax.f32 %v1356_v26, %v1358_v27  ;;  %v1366_v32 = vsel %vm571_vm6, %v485_v28, -inf  ;;  %v920_v33 = vpop.f32.mrb[6].mxu0 }
 0x1b5   : > { %v599_v37 = vmax.f32 %v1362_v30, %v1366_v32  ;;  %v1375_v38 = vsel %vm574_vm9, %v920_v33, -inf  ;;  %v488_v39 = vpop.f32.mrb[7].mxu0 }
 0x1b6   : > { %v602_v42 = vmax.f32 %v1371_v36, %v1375_v38  ;;  %v1386_v43 = vsel %vm572_vm10, %v488_v39, -inf }
 0x1b7   : > { %v600_v45 = vmax.f32 %v1382_v41, %v1386_v43 }
 0x1ba   : > { %v923_v49 = vpop.f32.mrb[0].mxu1 }
 0x1bb   : > { %v1402_v51 = vsel %vm577_vm11, %v923_v49, -inf  ;;  %v501_v52 = vpop.f32.mrb[1].mxu1 }
 0x1bc   : > { %v605_v54 = vmax.f32 %v601_v31, %v1402_v51  ;;  %v591_v55 = vsel %vm575_vm12, %v501_v52, -inf  ;;  %v924_v56 = vpop.f32.mrb[2].mxu1 }
 0x1bd   : > { %v603_v58 = vmax.f32 %v599_v37, %v591_v55  ;;  %v594_v59 = vsel %vm578_vm13, %v924_v56, -inf  ;;  %v504_v60 = vpop.f32.mrb[3].mxu1 }
 0x1be   : > { %v606_v63 = vmax.f32 %v602_v42, %v594_v59  ;;  %v592_v1 = vsel %vm576_vm14, %v504_v60, -inf }
 0x1bf   : > { %v604_v3 = vmax.f32 %v600_v45, %v592_v1 }
 0x1c2   : > { %v927_v61 = vpop.f32.mrb[4].mxu1 }
 0x1c3   : > { %v597_v5 = vsel %vm581_vm15, %v927_v61, -inf  ;;  %v517_v6 = vpop.f32.mrb[5].mxu1  ;;  %v693_v61 = vld [vmem:[#allocation3] sm:$0x1] }
 0x1c4   : > { %v609_v7 = vmax.f32 %v605_v54, %v597_v5  ;;  %v595_v9 = vsel %vm579_vm1, %v517_v6, -inf  ;;  %v928_v12 = vpop.f32.mrb[6].mxu1 }
 0x1c5   : > { %v607_v18 = vmax.f32 %v603_v58, %v595_v9  ;;  %v598_v19 = vsel %vm582_vm2, %v928_v12, -inf  ;;  %v520_v21 = vpop.f32.mrb[7].mxu1  ;;  %v704_v12 = vmul.f32 (!%p893_p3), %v1286_v23, %v1286_v23 }
 0x1c6   : > { %v610_v25 = vmax.f32 %v606_v63, %v598_v19  ;;  %v596_v28 = vsel %vm580_vm3, %v520_v21, -inf  ;;  %v705_v21 = vmul.f32 (!%p893_p3), %v1289_v24, %v1289_v24 }
 0x1c7   : > { %v608_v29 = vmax.f32 %v604_v3, %v596_v28 }
 0x1c8   : > { %v612_v31 = vmax.f32 %v609_v7, %v610_v25  ;;  %v702_v7 = vmul.f32 (!%p893_p3), %v1280_v20, %v1280_v20 }
 0x1c9   : > { %v611_v33 = vmax.f32 %v607_v18, %v608_v29 }
 0x1cb   : > { %v613_v0 = vmax.f32 %v611_v33, %v612_v31 }
 0x1cd   : > { %v614_v37 = vrot.slane %v613_v0, 4 }
 0x1cf   : > { %v615_v39 = vmax.f32 %v613_v0, %v614_v37 }
 0x1d1   : > { %v616_v42 = vrot.slane %v615_v39, 2 }
 0x1d3   : > { %v617_v45 = vmax.f32 %v615_v39, %v616_v42 }
 0x1d5   : > { %v618_v47 = vrot.slane %v617_v45, 1 }
 0x1d7   : > { %v1414_v48 = vmax.f32 %v617_v45, %v618_v47 }
 0x1d9   : > { %vm620_vm4 = vcmp.eq.f32.partialorder %v1362_v30, %v1414_v48  ;;  %vm621_vm5 = vcmp.eq.f32.partialorder %v1382_v41, %v1414_v48  ;;  %vm622_vm6 = vcmp.eq.f32.partialorder %v1356_v26, %v1414_v48  ;;  %vm623_vm7 = vcmp.eq.f32.partialorder %v1371_v36, %v1414_v48 }
 0x1da   : > { %vm624_vm8 = vcmp.eq.f32.partialorder %v1366_v32, %v1414_v48  ;;  %vm625_vm9 = vcmp.eq.f32.partialorder %v1386_v43, %v1414_v48  ;;  %vm626_vm10 = vcmp.eq.f32.partialorder %v1358_v27, %v1414_v48  ;;  %vm627_vm11 = vcmp.eq.f32.partialorder %v1375_v38, %v1414_v48 }
 0x1db   : > { %vm628_vm12 = vcmp.eq.f32.partialorder %v591_v55, %v1414_v48  ;;  %vm629_vm13 = vcmp.eq.f32.partialorder %v592_v1, %v1414_v48  ;;  %vm630_vm14 = vcmp.eq.f32.partialorder %v1402_v51, %v1414_v48  ;;  %vm631_vm15 = vcmp.eq.f32.partialorder %v594_v59, %v1414_v48  ;;  %v691_v51 = vld [vmem:[#allocation2] sm:$0x1] }
 0x1dc   : > { %vm632_vm1 = vcmp.eq.f32.partialorder %v595_v9, %v1414_v48  ;;  %vm633_vm2 = vcmp.eq.f32.partialorder %v596_v28, %v1414_v48  ;;  %vm634_vm3 = vcmp.eq.f32.partialorder %v597_v5, %v1414_v48  ;;  %vm635_vm0 = vcmp.eq.f32.partialorder %v598_v19, %v1414_v48 }
 0x1dd   : > { %v636_v49 = vsel %vm620_vm4, %v1329_v11, 1073741824  ;;  %v637_v50 = vsel %vm621_vm5, %v1338_v15, 1073741824  ;;  %v638_v52 = vsel %vm622_vm6, %v1322_v8, 1073741824  ;;  %v639_v53 = vsel %vm623_vm7, %v1335_v14, 1073741824 }
 0x1de   : > { %v640_v11 = vsel %vm624_vm8, %v1332_v13, 1073741824  ;;  %v641_v15 = vsel %vm625_vm9, %v1344_v17, 1073741824  ;;  %v642_v8 = vsel %vm626_vm10, %v1325_v10, 1073741824  ;;  %v643_v14 = vsel %vm627_vm11, %v1341_v16, 1073741824 }
 0x1df   : > { %v644_v26 = vsel %vm628_vm12, %v1378_v40, 1073741824  ;;  %v645_v13 = vsel %vm629_vm13, %v1394_v46, 1073741824  ;;  %v646_v17 = vsel %vm630_vm14, %v1369_v35, 1073741824  ;;  %v647_v10 = vsel %vm631_vm15, %v1389_v44, 1073741824 }
 0x1e0   : > { %v648_v16 = vsel %vm632_vm1, %v563_v62, 1073741824  ;;  %v649_v27 = vsel %vm633_vm2, %v564_v4, 1073741824  ;;  %v650_v30 = vsel %vm634_vm3, %v1408_v57, 1073741824  ;;  %v651_v32 = vsel %vm635_vm0, %v566_v2, 1073741824 }
 0x1e1   : > { %vm652_vm4 = vcmp.lt.s32.totalorder %v636_v49, %v640_v11  ;;  %vm654_vm5 = vcmp.lt.s32.totalorder %v637_v50, %v641_v15  ;;  %vm656_vm6 = vcmp.lt.s32.totalorder %v638_v52, %v642_v8  ;;  %vm658_vm7 = vcmp.lt.s32.totalorder %v639_v53, %v643_v14 }
 0x1e2   : > { %v653_v35 = vsel %vm652_vm4, %v636_v49, %v640_v11  ;;  %v655_v36 = vsel %vm654_vm5, %v637_v50, %v641_v15  ;;  %v657_v38 = vsel %vm656_vm6, %v638_v52, %v642_v8  ;;  %v659_v40 = vsel %vm658_vm7, %v639_v53, %v643_v14 }
 0x1e3   : > { %vm660_vm8 = vcmp.lt.s32.totalorder %v653_v35, %v644_v26  ;;  %vm662_vm9 = vcmp.lt.s32.totalorder %v655_v36, %v645_v13  ;;  %vm664_vm10 = vcmp.lt.s32.totalorder %v657_v38, %v646_v17  ;;  %vm666_vm11 = vcmp.lt.s32.totalorder %v659_v40, %v647_v10 }
 0x1e4   : > { %v661_v41 = vsel %vm660_vm8, %v653_v35, %v644_v26  ;;  %v663_v43 = vsel %vm662_vm9, %v655_v36, %v645_v13  ;;  %v665_v44 = vsel %vm664_vm10, %v657_v38, %v646_v17  ;;  %v667_v46 = vsel %vm666_vm11, %v659_v40, %v647_v10 }
 0x1e5   : > { %vm668_vm12 = vcmp.lt.s32.totalorder %v661_v41, %v648_v16  ;;  %vm670_vm13 = vcmp.lt.s32.totalorder %v663_v43, %v649_v27  ;;  %vm672_vm0 = vcmp.lt.s32.totalorder %v665_v44, %v650_v30  ;;  %vm674_vm14 = vcmp.lt.s32.totalorder %v667_v46, %v651_v32 }
 0x1e6   : > { %v669_v54 = vsel %vm668_vm12, %v661_v41, %v648_v16  ;;  %v671_v55 = vsel %vm670_vm13, %v663_v43, %v649_v27  ;;  %v673_v56 = vsel %vm672_vm0, %v665_v44, %v650_v30  ;;  %v675_v57 = vsel %vm674_vm14, %v667_v46, %v651_v32 }
 0x1e7   : > { %vm676_vm15 = vcmp.lt.s32.totalorder %v669_v54, %v671_v55  ;;  %vm678_vm1 = vcmp.lt.s32.totalorder %v673_v56, %v675_v57  ;;  %vm692_vm2 = vcmp.gt.f32.partialorder %v1414_v48, %v691_v51  ;;  %v703_v9 = vmul.f32 (!%p893_p3), %v1283_v22, %v1283_v22 }
 0x1e8   : > { %v677_v58 = vsel %vm676_vm15, %v669_v54, %v671_v55  ;;  %v679_v59 = vsel %vm678_vm1, %v673_v56, %v675_v57  ;;  %v696_v60 = vsel %vm692_vm2, %v1414_v48, %v691_v51  ;;  %v706_v19 = vmul.f32 (!%p893_p3), %v1297_v34, %v1297_v34 }
 0x1e9   : > { %vm680_vm3 = vcmp.lt.s32.totalorder %v677_v58, %v679_v59  ;;  %697 = vst [vmem:[#allocation2] sm:$0x1] %v696_v60  ;;  %v707_v25 = vadd.f32 (!%p893_p3), %v703_v9, %v702_v7  ;;  %vm1565_vm7 = vcmask (!%p893_p3), 1043456  }
 0x1ea   : > { %v681_v62 = vsel %vm680_vm3, %v677_v58, %v679_v59  ;;  %v710_v22 = vsel (!%p893_p3), %vm1565_vm7, %v706_v19, 0.0 }
 0x1eb   : > { %v682_v63 = vrot.slane %v681_v62, 4  ;;  %v708_v20 = vadd.f32 (!%p893_p3), %v707_v25, %v704_v12 }
 0x1ed   : > { %vm683_vm4 = vcmp.lt.s32.totalorder %v681_v62, %v682_v63  ;;  %v709_v28 = vadd.f32 (!%p893_p3), %v708_v20, %v705_v21 }
 0x1ee   : > { %v684_v1 = vsel %vm683_vm4, %v681_v62, %v682_v63 }
 0x1ef   : > { %v685_v2 = vrot.slane %v684_v1, 2  ;;  %v711_v29 = vadd.f32 (!%p893_p3), %v710_v22, %v709_v28 }
 0x1f0   : > { %v718_v42 = vld [vmem:[#allocation2] sm:$0x1] (!%p893_p3) }
 0x1f1   : > { %vm686_vm5 = vcmp.lt.s32.totalorder %v684_v1, %v685_v2  ;;  %v712_v23 = vrot.slane (!%p893_p3), %v711_v29, 4 }
 0x1f2   : > { %v687_v3 = vsel %vm686_vm5, %v684_v1, %v685_v2  ;;  %701 = sbr.rel (%p893_p3) target bundleno = 525 (0x20d), region = 112 }
 0x1f3   : > { %v688_v4 = vrot.slane %v687_v3, 1  ;;  %v713_v31 = vadd.f32 (!%p893_p3), %v712_v23, %v711_v29 }
 0x1f5   : > { %vm689_vm6 = vcmp.lt.s32.totalorder %v687_v3, %v688_v4  ;;  %v714_v33 = vrot.slane (!%p893_p3), %v713_v31, 2 }
 0x1f6   : > { %v690_v5 = vsel %vm689_vm6, %v687_v3, %v688_v4 }
 0x1f7   : > { %v694_v6 = vsel %vm692_vm2, %v690_v5, %v693_v61  ;;  %v715_v0 = vadd.f32 (!%p893_p3), %v714_v33, %v713_v31 }
 0x1f8   : > { %695 = vst [vmem:[#allocation3] sm:$0x1] %v694_v6 }
 0x1f9   : > { %v716_v34 = vrot.slane %v715_v0, 1 }
 0x1fb   : > { %v717_v37 = vadd.f32 %v716_v34, %v715_v0 }
 0x1fd   : > { %v719_v39 = vmax.f32 %v717_v37, 1e-24 }
 0x1ff   : > { %v723_v18 = vld [vmem:[#allocation3] sm:$0x1]  ;;  %1036 = vrsqrt.f32 %v719_v39 }
 0x200   : > { %724 = vst [vmem:[%s342_s14] sm:$0x1] %v723_v18 }
 0x209   : > { %v1037_v45 = vpop.eup %1036 }
 0x20a   : > { %v721_v47 = vmul.f32 %v1037_v45, %v718_v42 }
 0x20c   : > { %722 = vst [vmem:[%s335_s25] sm:$0x1] %v721_v47 }
 0x20d PF: > { %s14_s22 = sadd.s32 1, %s1124_s22   ;;  %s1566_s5 = sld [smem:[#allocation6_spill]] }
 0x20e   : > { %p11_p4 = scmp.ge.s32.totalorder %s14_s22, 10   ;;  %s1567_s12 = smov %s1088_s13 }
 0x20f   : > { %s1568_s13 = smov %s1239_s9  ;;  %s1569_s14 = smov %s1096_s15 }
 0x210   : > { %s1570_s15 = smov %s1236_s8  ;;  %s1571_s16 = smov %s1112_s19 }
 0x211   : > { %s1572_s17 = smov %s1116_s20  ;;  %s1573_s18 = smov %s1120_s21 }
 0x212   : > { %s1574_s19 = smov %s1578_s23  ;;  %s1575_s20 = smov %s1582_s24 }
 0x213   : > { %s1576_s21 = smov %s1566_s5  ;;  %13 = sbr.rel (!%p11_p4) target bundleno = 6 (0x6), region = 167 }

// kernel: squeeze.19
= control target key start
LH: loop header
LB: loop body
LE: loop exit
PB: predicated region body
PF: predicated region fallthrough
CT: control target
= control target key end

     0   :  { %s149_s0 = inlined_call_operand.vmem [shape: f32[2,256], index: 0, kind: input, shape index: {}]   ;;  %s150_s1 = inlined_call_operand.hbm [shape: f32[2,1,16,16], index: 1, kind: output, shape index: {}]  }
   0x1   :  { %v71_v0 = vld [vmem:[%s149_s0 + $0x2] sm:$0x3]  ;;  %v9_v1 = vld [vmem:[%s149_s0] sm:$0x3] }
   0x2   :  { %8 = vst [vmem:[#allocation2 + $0x8] sm:$0x3] %v71_v0  ;;  %10 = vst [vmem:[#allocation2] sm:$0x3] %v9_v1 }
   0x3   :  { %2 = vsyncpa [#allocation1], 0  ;;  %vm12_vm0 = vcmask 130048   ;;  %s104_s0 = smov 112   ;;  %s105_s10 = smov 80  }
   0x4   :  { %s106_s11 = smov 96   ;;  %s107_s12 = smov 64  }
   0x5   :  { %s108_s13 = smov 48   ;;  %s109_s14 = smov 32  }
   0x6   :  { %s110_s15 = smov 16   ;;  %s111_s16 = smov [#allocation0]  }
   0x7   :  { %s65_s17 = sshll.u32 %s111_s16, 4  ;;  %s66_s17 = int_to_ptr.vmem [resolvable:$true] %s65_s17 }
   0x8   :  { %s80_s18 = scalar_lea.vmem %s66_s17, 512  ;;  %p85_p1 = scmp.lt.s32.totalorder %s66_s17, %s66_s17 }
   0x9   :  { %v19_v2 = vld.sshfl [vmem:[#allocation2] sm:$0xff pattern:$0x99999180]   ;;  %p81_p0 = scmp.ne.s32.totalorder %s66_s17, %s80_s18  ;;  %p86_p2 = scmp.lt.s32.totalorder %s80_s18, %s80_s18 }
   0xa   :  { %v11_v3 = vld [vmem:[#allocation2] sm:$0x3]   ;;  %20 = vrot.lane.b32.xlu0 %v19_v2, %s104_s0  ;;  %32 = vrot.lane.b32.xlu1 %v19_v2, %s105_s10  ;;  %v15_v4 = vld [vmem:[#allocation2 + $0x8] sm:$0x3]  }
   0xb   :  { %13 = vst.msk [vmem:[#allocation0] ss:$16 sm:$0x3] %vm12_vm0, %v11_v3   ;;  %18 = vst.msk [vmem:[#allocation0 + $0x8] ss:$16 sm:$0x3] %vm12_vm0, %v15_v4   ;;  %p87_p3 = por %p86_p2, %p85_p1 }
   0xd   :  { %p88_p4 = pnand %p87_p3, %p81_p0 }
   0xe   :  { %26 = vrot.lane.b32.xlu0 %v19_v2, %s106_s11  ;;  %38 = vrot.lane.b32.xlu1 %v19_v2, %s107_s12 }
  0x12   :  { %44 = vrot.lane.b32.xlu0 %v19_v2, %s108_s13  ;;  %50 = vrot.lane.b32.xlu1 %v19_v2, %s109_s14 }
  0x16   :  { %56 = vrot.lane.b32.xlu0 %v19_v2, %s110_s15 }
  0x7c   :  { %v21_v5 = vpop.permute.xlu0 %20   ;;  %v33_v6 = vpop.permute.xlu1 %32  }
  0x7d   :  { %24 = vst.msk [vmem:[#allocation0 + $0x1] ss:$8 sm:$0xf] %vm12_vm0, %v21_v5   ;;  %36 = vst.msk [vmem:[#allocation0 + $0x3] ss:$8 sm:$0xf] %vm12_vm0, %v33_v6  }
  0x80   :  { %v27_v7 = vpop.permute.xlu0 %26   ;;  %v39_v8 = vpop.permute.xlu1 %38  }
  0x81   :  { %30 = vst.msk [vmem:[#allocation0 + $0x2] ss:$8 sm:$0xf] %vm12_vm0, %v27_v7   ;;  %42 = vst.msk [vmem:[#allocation0 + $0x4] ss:$8 sm:$0xf] %vm12_vm0, %v39_v8  }
  0x84   :  { %v45_v9 = vpop.permute.xlu0 %44   ;;  %v51_v10 = vpop.permute.xlu1 %50  }
  0x85   :  { %48 = vst.msk [vmem:[#allocation0 + $0x5] ss:$8 sm:$0xf] %vm12_vm0, %v45_v9   ;;  %54 = vst.msk [vmem:[#allocation0 + $0x6] ss:$8 sm:$0xf] %vm12_vm0, %v51_v10  }
  0x88   :  { %v57_v11 = vpop.permute.xlu0 %56  }
  0x89   :  { %60 = vst.msk [vmem:[#allocation0 + $0x7] ss:$8 sm:$0xf] %vm12_vm0, %v57_v11  }
  0x8a   :  { %91 = shalt.err (!%p88_p4)
}
  0x8b   :  { %s92_s21 = scalar_lea.hbm %s150_s1, 512 }
  0x8c   :  { %p93_p5 = scmp.ne.s32.totalorder %s150_s1, %s92_s21  ;;  %p96_p6 = scmp.lt.u32.totalorder %s92_s21, %s150_s1 }
  0x8e   :  { %p98_p7 = pnand %p96_p6, %p93_p5 }
  0x90   :  { %101 = shalt.err (!%p98_p7)
}
  0x91   :  { %68 = dma.vmem_to_hbm [thread:$0]  %s66_s17, 512, %s150_s1, [#allocation1]  }
  0x92   :  { %102 = dma.done.wait [#allocation1], 512  }
  0x93   :  { %103 = vsyncadd [#allocation1], 4294966784 }
  0x94   :  { %70 = vsyncpa [#allocation1], 1 }

</bundles_post_ra>
